<compile_context>
chip_gen: v5e
topology: v5e:2x2
jax: 0.10.0
libtpu: 0.0.40
codegen_flags: <defaults>
</compile_context>

<pallas_src>
import jax
import jax.numpy as jnp
from jax import lax
from jax.experimental import pallas as pl
from jax.experimental.pallas import tpu as pltpu


def _round_up(x, m):
    return (x + m - 1) // m * m


def _two_layer_kernel(x_ref, w1_ref, b1_ref, w2_ref, b2_ref, o_ref):
    # x_ref:  (TILE_N, D)        flattened input tile
    # w1_ref: (H_pad, D)         linear1 weight, PyTorch (out, in) layout
    # b1_ref: (1, H_pad)         linear1 bias (zero-padded)
    # w2_ref: (C_pad, H_pad)     linear2 weight, PyTorch layout, padded cols zeroed
    # b2_ref: (1, C_pad)         linear2 bias (zero-padded)
    # o_ref:  (TILE_N, C_pad)    lane-dense logits tile
    contract_last = (((1,), (1,)), ((), ()))  # x @ w.T without materializing w.T

    z1 = lax.dot_general(x_ref[...], w1_ref[...],
                         dimension_numbers=contract_last,
                         preferred_element_type=jnp.float32)
    z1 = z1 + b1_ref[...]                       # f32 epilogue (native on all gens)
    h1 = jax.nn.sigmoid(z1)                     # EUP exp, f32

    out = lax.dot_general(h1.astype(w2_ref.dtype), w2_ref[...],
                          dimension_numbers=contract_last,
                          preferred_element_type=jnp.float32)
    o_ref[...] = (out + b2_ref[...]).astype(o_ref.dtype)


def two_layer_net(x_nchw, w1, b1, w2, b2, *, tile_n=256, mxu_dtype=jnp.float32):
    """Forward pass of TwoLayerNet.

    x_nchw: (N, C, H, W) float32
    w1: (hidden, input_dim)  b1: (hidden,)     -- PyTorch nn.Linear layout
    w2: (classes, hidden)    b2: (classes,)
    returns logits (N, classes) float32

    mxu_dtype=jnp.bfloat16 halves HBM bytes for x/w1/w2 on v6e/v7x (accumulation
    and the sigmoid/bias epilogue stay f32).
    """
    n = x_nchw.shape[0]
    x_flat = x_nchw.reshape(n, -1)              # == torch.flatten(x, start_dim=1)
    d = x_flat.shape[1]
    h = w1.shape[0]
    c = w2.shape[0]

    # ---- padded, MXU/lane-friendly sizes -------------------------------------
    h_pad = _round_up(h, 128)                   # full MXU columns + dense vregs
    c_pad = _round_up(c, 128)                   # lane-dense output (no vst.msk)
    tile_n = max(8, min(tile_n, _round_up(n, 8)))
    n_pad = _round_up(n, tile_n)

    elt = jnp.dtype(mxu_dtype).itemsize

    # ---- parameter padding (in production, hoist this out of the hot path) ---
    # TODO(synk): pre-pad/cast weights once at load time instead of per call.
    w1_p = jnp.zeros((h_pad, d), mxu_dtype).at[:h, :].set(w1.astype(mxu_dtype))
    b1_p = jnp.zeros((1, h_pad), jnp.float32).at[0, :h].set(b1.astype(jnp.float32))
    # sigmoid(0) = 0.5, so the padded-hidden *columns* of w2 must be zero.
    w2_p = jnp.zeros((c_pad, h_pad), mxu_dtype).at[:c, :h].set(w2.astype(mxu_dtype))
    b2_p = jnp.zeros((1, c_pad), jnp.float32).at[0, :c].set(b2.astype(jnp.float32))

    x_p = x_flat.astype(mxu_dtype)
    if n_pad != n:
        x_p = jnp.zeros((n_pad, d), mxu_dtype).at[:n, :].set(x_p)

    grid = (n_pad // tile_n,)

    # ---- VMEM budget: double-buffered x/out tiles + resident weights ---------
    vmem_need = (
        2 * tile_n * d * elt                    # x tiles (double-buffered)
        + 2 * tile_n * c_pad * 4                # out tiles (f32, double-buffered)
        + (h_pad * d + c_pad * h_pad) * elt     # resident weights
        + (h_pad + c_pad) * 4                   # biases
    )
    vmem_limit = int(min(64 << 20, max(32 << 20, 2 * vmem_need)))

    flops = 2 * n_pad * d * h_pad + 2 * n_pad * h_pad * c_pad
    bytes_accessed = (
        n_pad * d * elt + h_pad * d * elt + c_pad * h_pad * elt
        + (h_pad + c_pad) * 4 + n_pad * c_pad * 4
    )

    out_pad = pl.pallas_call(
        _two_layer_kernel,
        out_shape=jax.ShapeDtypeStruct((n_pad, c_pad), jnp.float32),
        grid_spec=pltpu.PrefetchScalarGridSpec(
            num_scalar_prefetch=0,
            grid=grid,
            in_specs=[
                pl.BlockSpec((tile_n, d), lambda i: (i, 0)),     # x: tiled over batch
                pl.BlockSpec((h_pad, d), lambda i: (0, 0)),      # w1: VMEM-resident
                pl.BlockSpec((1, h_pad), lambda i: (0, 0)),      # b1
                pl.BlockSpec((c_pad, h_pad), lambda i: (0, 0)),  # w2
                pl.BlockSpec((1, c_pad), lambda i: (0, 0)),      # b2
            ],
            out_specs=pl.BlockSpec((tile_n, c_pad), lambda i: (i, 0)),
        ),
        compiler_params=pltpu.CompilerParams(
            dimension_semantics=("parallel",),                   # megacore on v7x
            vmem_limit_bytes=vmem_limit,
        ),
        cost_estimate=pl.CostEstimate(
            flops=flops,
            transcendentals=n_pad * h_pad,                       # sigmoid exp
            bytes_accessed=bytes_accessed,
        ),
    )(x_p, w1_p, b1_p, w2_p, b2_p)

    return out_pad[:n, :c]


def _reference(x_nchw, w1, b1, w2, b2):
    n = x_nchw.shape[0]
    xf = x_nchw.reshape(n, -1)
    z1 = xf @ w1.T + b1
    h1 = jax.nn.sigmoid(z1)
    return h1 @ w2.T + b2


if __name__ == "__main__":
    # Small shapes consistent with the module: x = (N, C, H, W) -> input_dim = C*H*W
    N, C, H, W = 2, 4, 16, 16
    input_dim = C * H * W          # 1024
    hidden_size = 32
    num_classes = 10

    key = jax.random.PRNGKey(0)
    kx, kw1, kb1, kw2, kb2 = jax.random.split(key, 5)

    x = jax.random.normal(kx, (N, C, H, W), dtype=jnp.float32)

    # Deterministic parameter init (uniform, PyTorch-Linear-like fan_in scaling).
    bound1 = 1.0 / (input_dim ** 0.5)
    w1 = jax.random.uniform(kw1, (hidden_size, input_dim), jnp.float32, -bound1, bound1)
    b1 = jax.random.uniform(kb1, (hidden_size,), jnp.float32, -bound1, bound1)
    bound2 = 1.0 / (hidden_size ** 0.5)
    w2 = jax.random.uniform(kw2, (num_classes, hidden_size), jnp.float32, -bound2, bound2)
    b2 = jax.random.uniform(kb2, (num_classes,), jnp.float32, -bound2, bound2)

    out = two_layer_net(x, w1, b1, w2, b2)
    out = jax.block_until_ready(out)

    ref = _reference(x, w1, b1, w2, b2)
    assert out.shape == (N, num_classes)
    assert jnp.allclose(out, ref, atol=1e-5, rtol=1e-5)

    print("KERNEL_OK")
</pallas_src>

<mosaic_0001>
module attributes {stable_mosaic.version = 11 : i64} {
  func.func @_two_layer_kernel(%arg0: i32, %arg1: memref<8x1024xf32, #tpu.memory_space<vmem>>, %arg2: memref<128x1024xf32, #tpu.memory_space<vmem>>, %arg3: memref<1x128xf32, #tpu.memory_space<vmem>>, %arg4: memref<128x128xf32, #tpu.memory_space<vmem>>, %arg5: memref<1x128xf32, #tpu.memory_space<vmem>>, %arg6: memref<8x128xf32, #tpu.memory_space<vmem>>) attributes {dimension_semantics = [#tpu.dimension_semantics<parallel>], iteration_bounds = array<i64: 1>, scalar_prefetch = 0 : i64, scratch_operands = 0 : i64, tpu.core_type = #tpu.core_type<tc>, window_params = [{transform_indices = @transform_0, window_bounds = array<i64: 8, 1024>}, {pipeline_mode = #tpu.pipeline_mode<synchronous>, transform_indices = @transform_1, window_bounds = array<i64: 128, 1024>}, {pipeline_mode = #tpu.pipeline_mode<synchronous>, transform_indices = @transform_2, window_bounds = array<i64: 1, 128>}, {pipeline_mode = #tpu.pipeline_mode<synchronous>, transform_indices = @transform_3, window_bounds = array<i64: 128, 128>}, {pipeline_mode = #tpu.pipeline_mode<synchronous>, transform_indices = @transform_4, window_bounds = array<i64: 1, 128>}, {transform_indices = @transform_5, window_bounds = array<i64: 8, 128>}]} {
    %c0 = arith.constant 0 : index
    %c0_0 = arith.constant 0 : index
    %0 = vector.load %arg1[%c0, %c0_0] : memref<8x1024xf32, #tpu.memory_space<vmem>>, vector<8x1024xf32>
    %c0_1 = arith.constant 0 : index
    %c0_2 = arith.constant 0 : index
    %1 = vector.load %arg2[%c0_1, %c0_2] : memref<128x1024xf32, #tpu.memory_space<vmem>>, vector<128x1024xf32>
    %cst = arith.constant dense<0.000000e+00> : vector<8x128xf32>
    %2 = tpu.matmul %0, %1, %cst {dimension_numbers = #tpu.dot_dimension_numbers<[1], [1], [0], [0], [0, 0, 1, 0], [], []>} : vector<8x1024xf32>, vector<128x1024xf32>, vector<8x128xf32> -> vector<8x128xf32>
    %c0_3 = arith.constant 0 : index
    %c0_4 = arith.constant 0 : index
    %3 = vector.load %arg3[%c0_3, %c0_4] : memref<1x128xf32, #tpu.memory_space<vmem>>, vector<1x128xf32>
    %4 = vector.broadcast %3 : vector<1x128xf32> to vector<8x128xf32>
    %5 = arith.addf %2, %4 : vector<8x128xf32>
    %6 = arith.negf %5 : vector<8x128xf32>
    %7 = math.exp %6 : vector<8x128xf32>
    %cst_5 = arith.constant 1.000000e+00 : f32
    %8 = vector.broadcast %cst_5 : f32 to vector<8x128xf32>
    %9 = arith.addf %8, %7 : vector<8x128xf32>
    %10 = arith.divf %8, %9 : vector<8x128xf32>
    %c0_6 = arith.constant 0 : index
    %c0_7 = arith.constant 0 : index
    %11 = vector.load %arg4[%c0_6, %c0_7] : memref<128x128xf32, #tpu.memory_space<vmem>>, vector<128x128xf32>
    %cst_8 = arith.constant dense<0.000000e+00> : vector<8x128xf32>
    %12 = tpu.matmul %10, %11, %cst_8 {dimension_numbers = #tpu.dot_dimension_numbers<[1], [1], [0], [0], [0, 0, 1, 0], [], []>} : vector<8x128xf32>, vector<128x128xf32>, vector<8x128xf32> -> vector<8x128xf32>
    %c0_9 = arith.constant 0 : index
    %c0_10 = arith.constant 0 : index
    %13 = vector.load %arg5[%c0_9, %c0_10] : memref<1x128xf32, #tpu.memory_space<vmem>>, vector<1x128xf32>
    %14 = vector.broadcast %13 : vector<1x128xf32> to vector<8x128xf32>
    %15 = arith.addf %12, %14 : vector<8x128xf32>
    %c0_11 = arith.constant 0 : index
    %c0_12 = arith.constant 0 : index
    %16 = vector.load %arg6[%c0_11, %c0_12] : memref<8x128xf32, #tpu.memory_space<vmem>>, vector<8x128xf32>
    tpu.vector_store %arg6[%c0_11, %c0_12], %15 {strides = array<i32>} : memref<8x128xf32, #tpu.memory_space<vmem>>, vector<8x128xf32>,
    return
  }
  func.func @transform_0(%arg0: i32) -> (i32, i32) {
    %c0_i32 = arith.constant 0 : i32
    %c0_i32_0 = arith.constant 0 : i32
    return %arg0, %c0_i32 : i32, i32
  }
  func.func @transform_1(%arg0: i32) -> (i32, i32) {
    %c0_i32 = arith.constant 0 : i32
    %c0_i32_0 = arith.constant 0 : i32
    %c0_i32_1 = arith.constant 0 : i32
    return %c0_i32, %c0_i32_0 : i32, i32
  }
  func.func @transform_2(%arg0: i32) -> (i32, i32) {
    %c0_i32 = arith.constant 0 : i32
    %c0_i32_0 = arith.constant 0 : i32
    %c0_i32_1 = arith.constant 0 : i32
    return %c0_i32, %c0_i32_0 : i32, i32
  }
  func.func @transform_3(%arg0: i32) -> (i32, i32) {
    %c0_i32 = arith.constant 0 : i32
    %c0_i32_0 = arith.constant 0 : i32
    %c0_i32_1 = arith.constant 0 : i32
    return %c0_i32, %c0_i32_0 : i32, i32
  }
  func.func @transform_4(%arg0: i32) -> (i32, i32) {
    %c0_i32 = arith.constant 0 : i32
    %c0_i32_0 = arith.constant 0 : i32
    %c0_i32_1 = arith.constant 0 : i32
    return %c0_i32, %c0_i32_0 : i32, i32
  }
  func.func @transform_5(%arg0: i32) -> (i32, i32) {
    %c0_i32 = arith.constant 0 : i32
    %c0_i32_0 = arith.constant 0 : i32
    return %arg0, %c0_i32 : i32, i32
  }
}

</mosaic_0001>

<bundles_post_ra>
// kernel: tpu_custom_call.1
= control target key start
LH: loop header
LB: loop body
LE: loop exit
PB: predicated region body
PF: predicated region fallthrough
CT: control target
= control target key end

     0   :  { %10 = vsyncpa [#allocation3], 0  ;;  %s617_s0 = inlined_call_operand.hbm [shape: f32[8,1024], index: 0, kind: input, shape index: {}]   ;;  %s618_s1 = inlined_call_operand.hbm [shape: f32[128,1024], index: 1, kind: input, shape index: {}]   ;;  %s619_s2 = inlined_call_operand.vmem [shape: f32[1,128], index: 2, kind: input, shape index: {}]   ;;  %s620_s3 = inlined_call_operand.hbm [shape: f32[128,128], index: 3, kind: input, shape index: {}]   ;;  %s621_s4 = inlined_call_operand.vmem [shape: f32[1,128], index: 4, kind: input, shape index: {}]   ;;  %s622_s5 = inlined_call_operand.hbm [shape: f32[8,128], index: 5, kind: output, shape index: {}]  }
   0x1   :  { %11 = vsyncpa [#allocation6], 0  ;;  %s28_s20 = sshll.u32 %s618_s1, 4  ;;  %s29_s20 = int_to_ptr.hbm [resolvable:$true] %s28_s20 }
   0x2   :  { %12 = vsyncpa [#allocation4], 0  ;;  %s561_s21 = smov [#allocation5]   ;;  %s18_s25 = sshll.u32 %s617_s0, 4  ;;  %s19_s25 = int_to_ptr.hbm [resolvable:$true] %s18_s25 }
   0x3   :  { %s30_s22 = sshll.u32 %s561_s21, 4  ;;  %s562_s26 = smov 1024   ;;  %s31_s22 = int_to_ptr.vmem [resolvable:$true] %s30_s22 }
   0x4   :  { %s563_s27 = smov 64   ;;  %s564_s28 = smov [#allocation2]  }
   0x5   :  { %36 = dma.hbm_to_vmem [thread:$0]  %s29_s20, 16384, %s31_s22, [#allocation6], %s562_s26, %s562_s26, %s563_s27  }
   0x6   :  { %s20_s29 = sshll.u32 %s564_s28, 4  ;;  %s43_s7 = sshll.u32 %s620_s3, 4  ;;  %s21_s29 = int_to_ptr.vmem [resolvable:$true] %s20_s29  ;;  %s44_s7 = int_to_ptr.hbm [resolvable:$true] %s43_s7 }
   0x7   :  { %23 = dma.hbm_to_vmem [thread:$0]  %s19_s25, 1024, %s21_s29, [#allocation3]  }
   0x8   :  { %s565_s1 = smov [#allocation7]   ;;  %s566_s9 = smov 128  }
   0x9   :  { %s45_s8 = sshll.u32 %s565_s1, 4  ;;  %s567_s10 = smov 8   ;;  %s46_s8 = int_to_ptr.vmem [resolvable:$true] %s45_s8 }
   0xa   :  { %51 = dma.hbm_to_vmem [thread:$0]  %s44_s7, 2048, %s46_s8, [#allocation6], %s566_s9, %s566_s9, %s567_s10  }
   0xb   :  { %555 = dma.done.wait [#allocation3], 1024  }
   0xc   :  { %556 = vsyncadd [#allocation3], 4294966272 }
   0xd   :  { %557 = dma.done.wait [#allocation6], 18432  }
   0xe   :  { %558 = vsyncadd [#allocation6], 4294948864  ;;  %v196_v0 = vld [vmem:[#allocation5 + $0x3d0] sm:$0xff]  ;;  %v194_v1 = vld [vmem:[#allocation5 + $0x3c0] sm:$0xff]  ;;  %s568_s12 = smov [#allocation8]   ;;  %s433_s16 = sshll.u32 %s622_s5, 4  ;;  %s434_s16 = int_to_ptr.hbm [resolvable:$true] %s433_s16 }
   0xf   :  { %v197_v2 = vld [vmem:[#allocation5 + $0x3d8] sm:$0xff]  ;;  %246 = vmatpush.xpose.msra.mxu2 %v196_v0  ;;  %206 = vmatpush.xpose.msra.mxu0 %v194_v1  ;;  %v195_v3 = vld [vmem:[#allocation5 + $0x3c8] sm:$0xff]  ;;  %v188_v4 = vld [vmem:[#allocation5 + $0x390] sm:$0xff]  ;;  %s431_s13 = sshll.u32 %s568_s12, 4  ;;  %s432_s13 = int_to_ptr.vmem [resolvable:$true] %s431_s13 }
  0x10   :  { %266 = vmatpush.xpose.msra.mxu3 %v197_v2  ;;  %226 = vmatpush.xpose.msra.mxu1 %v195_v3  ;;  %v186_v5 = vld [vmem:[#allocation5 + $0x380] sm:$0xff]  ;;  %v189_v6 = vld [vmem:[#allocation5 + $0x398] sm:$0xff]  ;;  %v187_v7 = vld [vmem:[#allocation5 + $0x388] sm:$0xff] }
  0x11   :  { %v180_v8 = vld [vmem:[#allocation5 + $0x350] sm:$0xff]  ;;  %v178_v9 = vld [vmem:[#allocation5 + $0x340] sm:$0xff]  ;;  %v181_v10 = vld [vmem:[#allocation5 + $0x358] sm:$0xff] }
  0x12   :  { %v179_v11 = vld [vmem:[#allocation5 + $0x348] sm:$0xff]  ;;  %v172_v12 = vld [vmem:[#allocation5 + $0x310] sm:$0xff]  ;;  %v170_v13 = vld [vmem:[#allocation5 + $0x300] sm:$0xff] }
  0x13   :  { %247 = vmatpush.xpose.msra.mxu2 %v188_v4  ;;  %207 = vmatpush.xpose.msra.mxu0 %v186_v5  ;;  %v173_v14 = vld [vmem:[#allocation5 + $0x318] sm:$0xff]  ;;  %v171_v15 = vld [vmem:[#allocation5 + $0x308] sm:$0xff]  ;;  %v164_v16 = vld [vmem:[#allocation5 + $0x2d0] sm:$0xff] }
  0x14   :  { %267 = vmatpush.xpose.msra.mxu3 %v189_v6  ;;  %227 = vmatpush.xpose.msra.mxu1 %v187_v7  ;;  %v162_v17 = vld [vmem:[#allocation5 + $0x2c0] sm:$0xff]  ;;  %v165_v18 = vld [vmem:[#allocation5 + $0x2d8] sm:$0xff]  ;;  %v163_v19 = vld [vmem:[#allocation5 + $0x2c8] sm:$0xff] }
  0x15   :  { %v156_v20 = vld [vmem:[#allocation5 + $0x290] sm:$0xff]  ;;  %v154_v21 = vld [vmem:[#allocation5 + $0x280] sm:$0xff]  ;;  %v157_v22 = vld [vmem:[#allocation5 + $0x298] sm:$0xff] }
  0x16   :  { %v155_v23 = vld [vmem:[#allocation5 + $0x288] sm:$0xff]  ;;  %v148_v24 = vld [vmem:[#allocation5 + $0x250] sm:$0xff]  ;;  %v146_v25 = vld [vmem:[#allocation5 + $0x240] sm:$0xff] }
  0x17   :  { %248 = vmatpush.xpose.msra.mxu2 %v180_v8  ;;  %208 = vmatpush.xpose.msra.mxu0 %v178_v9  ;;  %v149_v26 = vld [vmem:[#allocation5 + $0x258] sm:$0xff]  ;;  %v147_v27 = vld [vmem:[#allocation5 + $0x248] sm:$0xff]  ;;  %v140_v28 = vld [vmem:[#allocation5 + $0x210] sm:$0xff] }
  0x18   :  { %268 = vmatpush.xpose.msra.mxu3 %v181_v10  ;;  %228 = vmatpush.xpose.msra.mxu1 %v179_v11  ;;  %v138_v29 = vld [vmem:[#allocation5 + $0x200] sm:$0xff]  ;;  %v141_v30 = vld [vmem:[#allocation5 + $0x218] sm:$0xff]  ;;  %v139_v31 = vld [vmem:[#allocation5 + $0x208] sm:$0xff] }
  0x19   :  { %v132_v32 = vld [vmem:[#allocation5 + $0x1d0] sm:$0xff]  ;;  %v130_v33 = vld [vmem:[#allocation5 + $0x1c0] sm:$0xff]  ;;  %v133_v34 = vld [vmem:[#allocation5 + $0x1d8] sm:$0xff] }
  0x1a   :  { %v131_v35 = vld [vmem:[#allocation5 + $0x1c8] sm:$0xff]  ;;  %v124_v36 = vld [vmem:[#allocation5 + $0x190] sm:$0xff]  ;;  %v122_v37 = vld [vmem:[#allocation5 + $0x180] sm:$0xff] }
  0x1b   :  { %249 = vmatpush.xpose.msra.mxu2 %v172_v12  ;;  %209 = vmatpush.xpose.msra.mxu0 %v170_v13  ;;  %v125_v38 = vld [vmem:[#allocation5 + $0x198] sm:$0xff]  ;;  %v123_v39 = vld [vmem:[#allocation5 + $0x188] sm:$0xff]  ;;  %v116_v40 = vld [vmem:[#allocation5 + $0x150] sm:$0xff] }
  0x1c   :  { %269 = vmatpush.xpose.msra.mxu3 %v173_v14  ;;  %229 = vmatpush.xpose.msra.mxu1 %v171_v15  ;;  %v114_v41 = vld [vmem:[#allocation5 + $0x140] sm:$0xff]  ;;  %v117_v42 = vld [vmem:[#allocation5 + $0x158] sm:$0xff]  ;;  %v115_v43 = vld [vmem:[#allocation5 + $0x148] sm:$0xff] }
  0x1d   :  { %v108_v44 = vld [vmem:[#allocation5 + $0x110] sm:$0xff]  ;;  %v106_v45 = vld [vmem:[#allocation5 + $0x100] sm:$0xff]  ;;  %v109_v46 = vld [vmem:[#allocation5 + $0x118] sm:$0xff] }
  0x1e   :  { %v107_v47 = vld [vmem:[#allocation5 + $0x108] sm:$0xff]  ;;  %v100_v48 = vld [vmem:[#allocation5 + $0xd0] sm:$0xff]  ;;  %v98_v49 = vld [vmem:[#allocation5 + $0xc0] sm:$0xff] }
  0x1f   :  { %250 = vmatpush.xpose.msra.mxu2 %v164_v16  ;;  %210 = vmatpush.xpose.msra.mxu0 %v162_v17  ;;  %v101_v50 = vld [vmem:[#allocation5 + $0xd8] sm:$0xff]  ;;  %v99_v51 = vld [vmem:[#allocation5 + $0xc8] sm:$0xff]  ;;  %v92_v52 = vld [vmem:[#allocation5 + $0x90] sm:$0xff] }
  0x20   :  { %270 = vmatpush.xpose.msra.mxu3 %v165_v18  ;;  %230 = vmatpush.xpose.msra.mxu1 %v163_v19  ;;  %v90_v53 = vld [vmem:[#allocation5 + $0x80] sm:$0xff]  ;;  %v93_v54 = vld [vmem:[#allocation5 + $0x98] sm:$0xff]  ;;  %v91_v55 = vld [vmem:[#allocation5 + $0x88] sm:$0xff] }
  0x21   :  { %v84_v56 = vld [vmem:[#allocation5 + $0x50] sm:$0xff]  ;;  %v82_v57 = vld [vmem:[#allocation5 + $0x40] sm:$0xff]  ;;  %v85_v58 = vld [vmem:[#allocation5 + $0x58] sm:$0xff] }
  0x22   :  { %v83_v59 = vld [vmem:[#allocation5 + $0x48] sm:$0xff]  ;;  %v76_v60 = vld [vmem:[#allocation5 + $0x10] sm:$0xff]  ;;  %v74_v61 = vld [vmem:[#allocation5] sm:$0xff] }
  0x23   :  { %251 = vmatpush.xpose.msra.mxu2 %v156_v20  ;;  %211 = vmatpush.xpose.msra.mxu0 %v154_v21  ;;  %v200_v62 = vld [vmem:[#allocation5 + $0x3f0] sm:$0xff]  ;;  %v77_v63 = vld [vmem:[#allocation5 + $0x18] sm:$0xff]  ;;  %v198_v0 = vld [vmem:[#allocation5 + $0x3e0] sm:$0xff] }
  0x24   :  { %271 = vmatpush.xpose.msra.mxu3 %v157_v22  ;;  %231 = vmatpush.xpose.msra.mxu1 %v155_v23  ;;  %v201_v1 = vld [vmem:[#allocation5 + $0x3f8] sm:$0xff]  ;;  %v75_v2 = vld [vmem:[#allocation5 + $0x8] sm:$0xff]  ;;  %v192_v4 = vld [vmem:[#allocation5 + $0x3b0] sm:$0xff] }
  0x25   :  { %v199_v3 = vld [vmem:[#allocation5 + $0x3e8] sm:$0xff]  ;;  %v190_v5 = vld [vmem:[#allocation5 + $0x3a0] sm:$0xff]  ;;  %v193_v6 = vld [vmem:[#allocation5 + $0x3b8] sm:$0xff] }
  0x26   :  { %v191_v7 = vld [vmem:[#allocation5 + $0x3a8] sm:$0xff]  ;;  %v184_v8 = vld [vmem:[#allocation5 + $0x370] sm:$0xff]  ;;  %v182_v9 = vld [vmem:[#allocation5 + $0x360] sm:$0xff] }
  0x27   :  { %252 = vmatpush.xpose.msra.mxu2 %v148_v24  ;;  %212 = vmatpush.xpose.msra.mxu0 %v146_v25  ;;  %v185_v10 = vld [vmem:[#allocation5 + $0x378] sm:$0xff]  ;;  %v183_v11 = vld [vmem:[#allocation5 + $0x368] sm:$0xff]  ;;  %v176_v12 = vld [vmem:[#allocation5 + $0x330] sm:$0xff] }
  0x28   :  { %272 = vmatpush.xpose.msra.mxu3 %v149_v26  ;;  %232 = vmatpush.xpose.msra.mxu1 %v147_v27  ;;  %v174_v13 = vld [vmem:[#allocation5 + $0x320] sm:$0xff]  ;;  %v177_v14 = vld [vmem:[#allocation5 + $0x338] sm:$0xff]  ;;  %v175_v15 = vld [vmem:[#allocation5 + $0x328] sm:$0xff] }
  0x29   :  { %v168_v16 = vld [vmem:[#allocation5 + $0x2f0] sm:$0xff]  ;;  %v166_v17 = vld [vmem:[#allocation5 + $0x2e0] sm:$0xff]  ;;  %v169_v18 = vld [vmem:[#allocation5 + $0x2f8] sm:$0xff] }
  0x2a   :  { %v167_v19 = vld [vmem:[#allocation5 + $0x2e8] sm:$0xff]  ;;  %v160_v20 = vld [vmem:[#allocation5 + $0x2b0] sm:$0xff]  ;;  %v158_v21 = vld [vmem:[#allocation5 + $0x2a0] sm:$0xff] }
  0x2b   :  { %253 = vmatpush.xpose.msra.mxu2 %v140_v28  ;;  %213 = vmatpush.xpose.msra.mxu0 %v138_v29  ;;  %v161_v22 = vld [vmem:[#allocation5 + $0x2b8] sm:$0xff]  ;;  %v159_v23 = vld [vmem:[#allocation5 + $0x2a8] sm:$0xff]  ;;  %v152_v24 = vld [vmem:[#allocation5 + $0x270] sm:$0xff] }
  0x2c   :  { %273 = vmatpush.xpose.msra.mxu3 %v141_v30  ;;  %233 = vmatpush.xpose.msra.mxu1 %v139_v31  ;;  %v68_v25 = vld [vmem:[#allocation2 + $0x10] sm:$0xff]  ;;  %v150_v26 = vld [vmem:[#allocation5 + $0x260] sm:$0xff]  ;;  %v153_v27 = vld [vmem:[#allocation5 + $0x278] sm:$0xff] }
  0x2d   :  { %v151_v28 = vld [vmem:[#allocation5 + $0x268] sm:$0xff]  ;;  %v66_v29 = vld [vmem:[#allocation2] sm:$0xff]  ;;  %v69_v30 = vld [vmem:[#allocation2 + $0x18] sm:$0xff] }
  0x2e   :  { %v144_v31 = vld [vmem:[#allocation5 + $0x230] sm:$0xff] }
  0x2f   :  { %254 = vmatpush.xpose.msra.mxu2 %v132_v32  ;;  %214 = vmatpush.xpose.msra.mxu0 %v130_v33  ;;  %v67_v32 = vld [vmem:[#allocation2 + $0x8] sm:$0xff]  ;;  %v142_v33 = vld [vmem:[#allocation5 + $0x220] sm:$0xff] }
  0x30   :  { %274 = vmatpush.xpose.msra.mxu3 %v133_v34  ;;  %234 = vmatpush.xpose.msra.mxu1 %v131_v35  ;;  %v145_v34 = vld [vmem:[#allocation5 + $0x238] sm:$0xff]  ;;  %v143_v35 = vld [vmem:[#allocation5 + $0x228] sm:$0xff] }
  0x33   :  { %255 = vmatpush.xpose.msra.mxu2 %v124_v36  ;;  %215 = vmatpush.xpose.msra.mxu0 %v122_v37  ;;  %v136_v36 = vld [vmem:[#allocation5 + $0x1f0] sm:$0xff]  ;;  %v134_v37 = vld [vmem:[#allocation5 + $0x1e0] sm:$0xff] }
  0x34   :  { %275 = vmatpush.xpose.msra.mxu3 %v125_v38  ;;  %235 = vmatpush.xpose.msra.mxu1 %v123_v39  ;;  %v137_v38 = vld [vmem:[#allocation5 + $0x1f8] sm:$0xff]  ;;  %v135_v39 = vld [vmem:[#allocation5 + $0x1e8] sm:$0xff] }
  0x37   :  { %256 = vmatpush.xpose.msra.mxu2 %v116_v40  ;;  %216 = vmatpush.xpose.msra.mxu0 %v114_v41  ;;  %v128_v40 = vld [vmem:[#allocation5 + $0x1b0] sm:$0xff]  ;;  %v126_v41 = vld [vmem:[#allocation5 + $0x1a0] sm:$0xff] }
  0x38   :  { %276 = vmatpush.xpose.msra.mxu3 %v117_v42  ;;  %236 = vmatpush.xpose.msra.mxu1 %v115_v43  ;;  %v129_v42 = vld [vmem:[#allocation5 + $0x1b8] sm:$0xff]  ;;  %v127_v43 = vld [vmem:[#allocation5 + $0x1a8] sm:$0xff] }
  0x3b   :  { %257 = vmatpush.xpose.msra.mxu2 %v108_v44  ;;  %217 = vmatpush.xpose.msra.mxu0 %v106_v45  ;;  %v120_v44 = vld [vmem:[#allocation5 + $0x170] sm:$0xff]  ;;  %v118_v45 = vld [vmem:[#allocation5 + $0x160] sm:$0xff] }
  0x3c   :  { %277 = vmatpush.xpose.msra.mxu3 %v109_v46  ;;  %237 = vmatpush.xpose.msra.mxu1 %v107_v47  ;;  %v121_v46 = vld [vmem:[#allocation5 + $0x178] sm:$0xff]  ;;  %v119_v47 = vld [vmem:[#allocation5 + $0x168] sm:$0xff] }
  0x3f   :  { %258 = vmatpush.xpose.msra.mxu2 %v100_v48  ;;  %218 = vmatpush.xpose.msra.mxu0 %v98_v49  ;;  %v112_v48 = vld [vmem:[#allocation5 + $0x130] sm:$0xff]  ;;  %v110_v49 = vld [vmem:[#allocation5 + $0x120] sm:$0xff] }
  0x40   :  { %278 = vmatpush.xpose.msra.mxu3 %v101_v50  ;;  %238 = vmatpush.xpose.msra.mxu1 %v99_v51  ;;  %v113_v50 = vld [vmem:[#allocation5 + $0x138] sm:$0xff]  ;;  %v111_v51 = vld [vmem:[#allocation5 + $0x128] sm:$0xff] }
  0x43   :  { %259 = vmatpush.xpose.msra.mxu2 %v92_v52  ;;  %219 = vmatpush.xpose.msra.mxu0 %v90_v53  ;;  %v104_v52 = vld [vmem:[#allocation5 + $0xf0] sm:$0xff]  ;;  %v102_v53 = vld [vmem:[#allocation5 + $0xe0] sm:$0xff] }
  0x44   :  { %279 = vmatpush.xpose.msra.mxu3 %v93_v54  ;;  %239 = vmatpush.xpose.msra.mxu1 %v91_v55  ;;  %v105_v54 = vld [vmem:[#allocation5 + $0xf8] sm:$0xff]  ;;  %v103_v55 = vld [vmem:[#allocation5 + $0xe8] sm:$0xff] }
  0x47   :  { %260 = vmatpush.xpose.msra.mxu2 %v84_v56  ;;  %220 = vmatpush.xpose.msra.mxu0 %v82_v57  ;;  %v96_v56 = vld [vmem:[#allocation5 + $0xb0] sm:$0xff]  ;;  %v94_v57 = vld [vmem:[#allocation5 + $0xa0] sm:$0xff] }
  0x48   :  { %280 = vmatpush.xpose.msra.mxu3 %v85_v58  ;;  %240 = vmatpush.xpose.msra.mxu1 %v83_v59  ;;  %v97_v58 = vld [vmem:[#allocation5 + $0xb8] sm:$0xff]  ;;  %v95_v59 = vld [vmem:[#allocation5 + $0xa8] sm:$0xff] }
  0x4b   :  { %261 = vmatpush.xpose.msra.mxu2 %v76_v60  ;;  %221 = vmatpush.xpose.msra.mxu0 %v74_v61  ;;  %v88_v60 = vld [vmem:[#allocation5 + $0x70] sm:$0xff]  ;;  %v86_v61 = vld [vmem:[#allocation5 + $0x60] sm:$0xff] }
  0x4c   :  { %281 = vmatpush.xpose.msra.mxu3 %v77_v63  ;;  %241 = vmatpush.xpose.msra.mxu1 %v75_v2  ;;  %v87_v63 = vld [vmem:[#allocation5 + $0x68] sm:$0xff]  ;;  %v81_v2 = vld [vmem:[#allocation5 + $0x38] sm:$0xff] }
  0x4e   :  { %262 = vmatmul.f32.vlgmr.msra.gmra.mxu2 %v68_v25  ;;  %222 = vmatmul.f32.vlgmr.msra.gmra.mxu0 %v66_v29  ;;  %v388_v25 = vld [vmem:[#allocation7 + $0x18] sm:$0xff] }
  0x4f   :  { %326 = vmatpush.xpose.msrb.mxu2 %v200_v62  ;;  %286 = vmatpush.xpose.msrb.mxu0 %v198_v0  ;;  %v89_v62 = vld [vmem:[#allocation5 + $0x78] sm:$0xff]  ;;  %v80_v0 = vld [vmem:[#allocation5 + $0x30] sm:$0xff] }
  0x50   :  { %346 = vmatpush.xpose.msrb.mxu3 %v201_v1  ;;  %306 = vmatpush.xpose.msrb.mxu1 %v199_v3  ;;  %v78_v1 = vld [vmem:[#allocation5 + $0x20] sm:$0xff]  ;;  %v400_v3 = vld [vmem:[#allocation7 + $0x78] sm:$0xff] }
  0x51   :  { %282 = vmatmul.f32.vlgmr.msra.gmra.mxu3 %v69_v30  ;;  %242 = vmatmul.f32.vlgmr.msra.gmra.mxu1 %v67_v32  ;;  %v386_v30 = vld [vmem:[#allocation7 + $0x8] sm:$0xff] }
  0x53   :  { %327 = vmatpush.xpose.msrb.mxu2 %v192_v4  ;;  %287 = vmatpush.xpose.msrb.mxu0 %v190_v5  ;;  %v72_v4 = vld [vmem:[#allocation2 + $0x30] sm:$0xff]  ;;  %v79_v5 = vld [vmem:[#allocation5 + $0x28] sm:$0xff] }
  0x54   :  { %347 = vmatpush.xpose.msrb.mxu3 %v193_v6  ;;  %307 = vmatpush.xpose.msrb.mxu1 %v191_v7  ;;  %v70_v6 = vld [vmem:[#allocation2 + $0x20] sm:$0xff]  ;;  %v73_v7 = vld [vmem:[#allocation2 + $0x38] sm:$0xff] }
  0x57   :  { %328 = vmatpush.xpose.msrb.mxu2 %v184_v8  ;;  %288 = vmatpush.xpose.msrb.mxu0 %v182_v9  ;;  %v71_v8 = vld [vmem:[#allocation2 + $0x28] sm:$0xff]  ;;  %v399_v9 = vld [vmem:[#allocation7 + $0x70] sm:$0xff] }
  0x58   :  { %348 = vmatpush.xpose.msrb.mxu3 %v185_v10  ;;  %308 = vmatpush.xpose.msrb.mxu1 %v183_v11  ;;  %v398_v10 = vld [vmem:[#allocation7 + $0x68] sm:$0xff]  ;;  %v397_v11 = vld [vmem:[#allocation7 + $0x60] sm:$0xff] }
  0x5b   :  { %329 = vmatpush.xpose.msrb.mxu2 %v176_v12  ;;  %289 = vmatpush.xpose.msrb.mxu0 %v174_v13  ;;  %v396_v12 = vld [vmem:[#allocation7 + $0x58] sm:$0xff]  ;;  %v395_v13 = vld [vmem:[#allocation7 + $0x50] sm:$0xff] }
  0x5c   :  { %349 = vmatpush.xpose.msrb.mxu3 %v177_v14  ;;  %309 = vmatpush.xpose.msrb.mxu1 %v175_v15  ;;  %v394_v14 = vld [vmem:[#allocation7 + $0x48] sm:$0xff]  ;;  %v393_v15 = vld [vmem:[#allocation7 + $0x40] sm:$0xff] }
  0x5f   :  { %330 = vmatpush.xpose.msrb.mxu2 %v168_v16  ;;  %290 = vmatpush.xpose.msrb.mxu0 %v166_v17  ;;  %v392_v16 = vld [vmem:[#allocation7 + $0x38] sm:$0xff]  ;;  %v391_v17 = vld [vmem:[#allocation7 + $0x30] sm:$0xff] }
  0x60   :  { %350 = vmatpush.xpose.msrb.mxu3 %v169_v18  ;;  %310 = vmatpush.xpose.msrb.mxu1 %v167_v19  ;;  %v453_v18 = vld [vmem:[%s619_s2] ss:$0 sm:$0xff] }
  0x63   :  { %331 = vmatpush.xpose.msrb.mxu2 %v160_v20  ;;  %291 = vmatpush.xpose.msrb.mxu0 %v158_v21  ;;  %v390_v20 = vld [vmem:[#allocation7 + $0x28] sm:$0xff] }
  0x64   :  { %351 = vmatpush.xpose.msrb.mxu3 %v161_v22  ;;  %311 = vmatpush.xpose.msrb.mxu1 %v159_v23  ;;  %v389_v23 = vld [vmem:[#allocation7 + $0x20] sm:$0xff] }
  0x67   :  { %332 = vmatpush.xpose.msrb.mxu2 %v152_v24  ;;  %292 = vmatpush.xpose.msrb.mxu0 %v150_v26 }
  0x68   :  { %352 = vmatpush.xpose.msrb.mxu3 %v153_v27  ;;  %312 = vmatpush.xpose.msrb.mxu1 %v151_v28  ;;  %v387_v27 = vld [vmem:[#allocation7 + $0x10] sm:$0xff] }
  0x6b   :  { %333 = vmatpush.xpose.msrb.mxu2 %v144_v31  ;;  %293 = vmatpush.xpose.msrb.mxu0 %v142_v33  ;;  %v385_v33 = vld [vmem:[#allocation7] sm:$0xff] }
  0x6c   :  { %353 = vmatpush.xpose.msrb.mxu3 %v145_v34  ;;  %313 = vmatpush.xpose.msrb.mxu1 %v143_v35 }
  0x6f   :  { %334 = vmatpush.xpose.msrb.mxu2 %v136_v36  ;;  %294 = vmatpush.xpose.msrb.mxu0 %v134_v37 }
  0x70   :  { %354 = vmatpush.xpose.msrb.mxu3 %v137_v38  ;;  %314 = vmatpush.xpose.msrb.mxu1 %v135_v39 }
  0x73   :  { %335 = vmatpush.xpose.msrb.mxu2 %v128_v40  ;;  %295 = vmatpush.xpose.msrb.mxu0 %v126_v41 }
  0x74   :  { %355 = vmatpush.xpose.msrb.mxu3 %v129_v42  ;;  %315 = vmatpush.xpose.msrb.mxu1 %v127_v43 }
  0x77   :  { %336 = vmatpush.xpose.msrb.mxu2 %v120_v44  ;;  %296 = vmatpush.xpose.msrb.mxu0 %v118_v45 }
  0x78   :  { %356 = vmatpush.xpose.msrb.mxu3 %v121_v46  ;;  %316 = vmatpush.xpose.msrb.mxu1 %v119_v47 }
  0x7b   :  { %337 = vmatpush.xpose.msrb.mxu2 %v112_v48  ;;  %297 = vmatpush.xpose.msrb.mxu0 %v110_v49 }
  0x7c   :  { %357 = vmatpush.xpose.msrb.mxu3 %v113_v50  ;;  %317 = vmatpush.xpose.msrb.mxu1 %v111_v51 }
  0x7f   :  { %338 = vmatpush.xpose.msrb.mxu2 %v104_v52  ;;  %298 = vmatpush.xpose.msrb.mxu0 %v102_v53 }
  0x80   :  { %358 = vmatpush.xpose.msrb.mxu3 %v105_v54  ;;  %318 = vmatpush.xpose.msrb.mxu1 %v103_v55  ;;  %v454_v54 = vld [vmem:[%s621_s4] ss:$0 sm:$0xff] }
  0x83   :  { %339 = vmatpush.xpose.msrb.mxu2 %v96_v56  ;;  %299 = vmatpush.xpose.msrb.mxu0 %v94_v57 }
  0x84   :  { %359 = vmatpush.xpose.msrb.mxu3 %v97_v58  ;;  %319 = vmatpush.xpose.msrb.mxu1 %v95_v59 }
  0x87   :  { %340 = vmatpush.xpose.msrb.mxu2 %v88_v60  ;;  %300 = vmatpush.xpose.msrb.mxu0 %v86_v61 }
  0x88   :  { %360 = vmatpush.xpose.msrb.mxu3 %v89_v62  ;;  %320 = vmatpush.xpose.msrb.mxu1 %v87_v63 }
  0x8b   :  { %341 = vmatpush.xpose.msrb.mxu2 %v80_v0  ;;  %301 = vmatpush.xpose.msrb.mxu0 %v78_v1 }
  0x8c   :  { %361 = vmatpush.xpose.msrb.mxu3 %v81_v2  ;;  %321 = vmatpush.xpose.msrb.mxu1 %v79_v5 }
  0x8e   :  { %342 = vmatmul.f32.vlgmr.msrb.gmra.mxu2 %v72_v4  ;;  %302 = vmatmul.f32.vlgmr.msrb.gmra.mxu0 %v70_v6 }
  0x8f   :  { %405 = vmatpush.xpose.msra.mxu0 %v400_v3  ;;  %362 = vmatmul.f32.vlgmr.msrb.gmra.mxu3 %v73_v7 }
  0x90   :  { %322 = vmatmul.f32.vlgmr.msrb.gmra.mxu1 %v71_v8 }
  0x93   :  { %406 = vmatpush.xpose.msra.mxu0 %v399_v9 }
  0x97   :  { %407 = vmatpush.xpose.msra.mxu0 %v398_v10 }
  0x9b   :  { %408 = vmatpush.xpose.msra.mxu0 %v397_v11 }
  0x9f   :  { %409 = vmatpush.xpose.msra.mxu0 %v396_v12 }
  0xa3   :  { %410 = vmatpush.xpose.msra.mxu0 %v395_v13 }
  0xa7   :  { %411 = vmatpush.xpose.msra.mxu0 %v394_v14 }
  0xab   :  { %412 = vmatpush.xpose.msra.mxu0 %v393_v15 }
  0xaf   :  { %413 = vmatpush.xpose.msra.mxu0 %v392_v16 }
  0xb3   :  { %414 = vmatpush.xpose.msra.mxu0 %v391_v17 }
  0xb7   :  { %415 = vmatpush.xpose.msra.mxu0 %v390_v20 }
  0xbb   :  { %416 = vmatpush.xpose.msra.mxu0 %v389_v23 }
  0xbf   :  { %417 = vmatpush.xpose.msra.mxu0 %v388_v25 }
  0xc3   :  { %418 = vmatpush.xpose.msra.mxu0 %v387_v27 }
  0xc7   :  { %419 = vmatpush.xpose.msra.mxu0 %v386_v30 }
  0xcb   :  { %v223_v19 = vpop.f32.mrf.mxu0  ;;  %420 = vmatpush.xpose.msra.mxu0 %v385_v33 }
  0xcc   :  { %v224_v21 = vadd.f32 %v453_v18, %v223_v19 }
  0xce   :  { %v243_v22 = vpop.f32.mrf.mxu1 }
  0xcf   :  { %v244_v24 = vadd.f32 %v243_v22, %v224_v21 }
  0xd1   :  { %v263_v26 = vpop.f32.mrf.mxu2 }
  0xd2   :  { %v264_v28 = vadd.f32 %v263_v26, %v244_v24 }
  0xd4   :  { %v283_v29 = vpop.f32.mrf.mxu3 }
  0xd5   :  { %v284_v31 = vadd.f32 %v283_v29, %v264_v28 }
 0x10b   :  { %v303_v32 = vpop.f32.mrf.mxu0 }
 0x10c   :  { %v304_v34 = vadd.f32 %v303_v32, %v284_v31 }
 0x10d   :  { %v323_v35 = vpop.f32.mrf.mxu1 }
 0x10e   :  { %v324_v36 = vadd.f32 %v323_v35, %v304_v34 }
 0x111   :  { %v343_v37 = vpop.f32.mrf.mxu2 }
 0x112   :  { %v344_v38 = vadd.f32 %v343_v37, %v324_v36  ;;  %v363_v39 = vpop.f32.mrf.mxu3 }
 0x114   :  { %v364_v40 = vadd.f32 %v363_v39, %v344_v38 }
 0x116   :  { %v444_v41 = vmul.f32 -1.442695, %v364_v40 }
 0x118   :  { %455 = vpow2.f32 %v444_v41 }
 0x11e   :  { %v456_v42 = vpop.eup %455 }
 0x11f   :  { %v369_v43 = vadd.f32 1.0, %v456_v42 }
 0x121   :  { %457 = vrcp.f32 %v369_v43  ;;  %v381_v47 = vand.u32 2147483648, %v369_v43  ;;  %v379_v49 = vand.u32 2147483647, %v369_v43  ;;  %vm375_vm1 = vweird.f32 %v369_v43 }
 0x123   :  { %v382_v51 = vor.u32 1.1754944e-38, %v381_v47  ;;  %vm380_vm3 = vcmp.eq.f32.partialorder %v379_v49, 8.507059e+37 }
 0x127   :  { %v458_v44 = vpop.eup %457 }
 0x128   :  { %v371_v45 = vmul.f32 %v458_v44, %v369_v43  ;;  %vm376_vm0 = vweird.f32 %v458_v44 }
 0x129   :  { %vm377_vm2 = vmor %vm375_vm1, %vm376_vm0 }
 0x12a   :  { %v372_v46 = vsub.f32 1.0, %v371_v45 }
 0x12c   :  { %v373_v48 = vmul.f32 %v458_v44, %v372_v46 }
 0x12e   :  { %v374_v50 = vadd.f32 %v458_v44, %v373_v48 }
 0x130   :  { %v378_v52 = vsel %vm377_vm2, %v458_v44, %v374_v50 }
 0x131   :  { %v383_v53 = vsel %vm380_vm3, %v382_v51, %v378_v52 }
 0x132   :  { %421 = vmatmul.f32.vlgmr.msra.gmra.mxu0 %v383_v53 }
 0x1af   :  { %v422_v55 = vpop.f32.mrf.mxu0 }
 0x1b0   :  { %v423_v56 = vadd.f32 %v454_v54, %v422_v55 }
 0x1b2   :  { %425 = vst [vmem:[#allocation8] sm:$0xff] %v423_v56 }
 0x1b3   :  { %436 = dma.vmem_to_hbm [thread:$0]  %s432_s13, 128, %s434_s16, [#allocation4]  }
 0x1b4   :  { %559 = dma.done.wait [#allocation4], 128  }
 0x1b5   :  { %560 = vsyncadd [#allocation4], 4294967168 }
 0x1b6   :  { %441 = vsyncpa [#allocation3], 1 }
 0x1b7   :  { %442 = vsyncpa [#allocation6], 1 }
 0x1b8   :  { %443 = vsyncpa [#allocation4], 1 }

</bundles_post_ra>
